<compile_context>
chip_gen: v5e
topology: v5e:2x2
jax: 0.10.0
libtpu: 0.0.40
codegen_flags: <defaults>
</compile_context>

<pallas_src>
import functools
import math

import jax
import jax.numpy as jnp
from jax.experimental import pallas as pl
from jax.experimental.pallas import tpu as pltpu


_TARGET_BLOCK_BYTES = 4 << 20          # ~4 MiB per streamed operand per buffer
_VMEM_LIMIT_BYTES = 32 * 1024 * 1024   # safe on v5e/v6e (128 MiB) and v7x (64 MiB)
_MIN_GRID_STEPS = 4                    # keep pipelining + v7x 2-TC sharding alive


def _wsl1_kernel(*refs, beta: float, has_cw: bool, has_w: bool, compute_dtype):
    it = iter(refs)
    x_ref = next(it)
    t_ref = next(it)
    cw_ref = next(it) if has_cw else None
    if has_w:
        w_ref = next(it)
        e_ref = next(it)
    out_ref = next(it)

    cd = compute_dtype
    x = x_ref[...].astype(cd)                      # (TR, LANES)
    t = t_ref[...].astype(cd)
    t = jnp.where(jnp.isnan(t), x, t)              # NaN targets -> zero diff
    diff = x - t
    if has_cw:
        diff = diff * cw_ref[...].astype(cd)       # (1, LANES) broadcast
    n = jnp.abs(diff)
    if beta < 1e-5:
        loss = n
    else:
        # constant multiply instead of per-element divide
        loss = jnp.where(n < beta, (0.5 / beta) * (n * n), n - 0.5 * beta)
    if has_w:
        # Expand per-anchor weights (TR, K) -> (TR, LANES = K*C): each weight
        # repeated across C consecutive lanes via a constant 0/1 MXU matmul
        # (hidden under the HBM-bound stream).
        w_exp = jnp.dot(w_ref[...], e_ref[...],
                        preferred_element_type=jnp.float32)
        loss = loss * w_exp.astype(cd)
    out_ref[...] = loss.astype(out_ref.dtype)


def _pick_compute_dtype(in_dtype):
    """bf16 math for bf16 I/O on bf16-VALU chips (v6e/v7x); f32 otherwise."""
    if jnp.dtype(in_dtype) != jnp.dtype(jnp.bfloat16):
        return jnp.float32
    try:
        kind = jax.devices()[0].device_kind.lower()
    except Exception:
        return jnp.float32
    if any(s in kind for s in ("v2", "v3", "v4", "v5")):
        return jnp.float32          # no bf16 VALU on v5e and older
    return jnp.bfloat16


def weighted_smooth_l1_loss(inp, target, weights=None, code_weights=None,
                            beta=1.0 / 9.0, block_rows=None):
    """
    Args:
        inp:     (B, A, C) float tensor (f32 or bf16).
        target:  (B, A, C) float tensor (may contain NaNs).
        weights: (B, A) float tensor or None.
        code_weights: (C,) float or None.
    Returns:
        loss: (B, A, C), same dtype as `inp` (no reduction, matches PyTorch).
    """
    B, A, C = inp.shape
    assert target.shape == (B, A, C)
    out_dtype = inp.dtype
    in_itemsize = jnp.dtype(inp.dtype).itemsize
    compute_dtype = _pick_compute_dtype(inp.dtype)

    # ---- lane-dense layout ---------------------------------------------------
    lanes = (C * 128) // math.gcd(C, 128)          # lcm(C, 128)
    K = lanes // C                                 # anchors per slab row
    BA = B * A
    N = BA * C
    R = -(-BA // K)                                # slab rows (cdiv)
    n_slab = R * lanes
    ragged = (n_slab != N)                         # only when BA % K != 0

    # ---- row tiling ------------------------------------------------------------
    if block_rows is None:
        tr = max(8, (_TARGET_BLOCK_BYTES // (lanes * in_itemsize)) // 8 * 8)
        # Keep at least ~_MIN_GRID_STEPS grid steps for pipelining / megacore.
        if R >= _MIN_GRID_STEPS * 8:
            cap = max(8, ((-(-R // _MIN_GRID_STEPS)) // 8) * 8)
            tr = min(tr, cap)
    else:
        tr = max(1, int(block_rows))
    tr = min(tr, R)
    if tr < R:                                     # (8, 128) rule: multiple of 8
        tr = max(8, (tr // 8) * 8)
    grid_r = -(-R // tr)                           # partial last block is masked

    def _to_slab(a):
        flat = a.reshape(-1)
        if ragged:                                 # pad < one slab row only
            flat = jnp.pad(flat, (0, n_slab - N))
        return flat.reshape(R, lanes)

    x2 = _to_slab(inp)
    t2 = _to_slab(target)

    has_cw = code_weights is not None
    has_w = weights is not None

    args = [x2, t2]
    in_specs = [
        pl.BlockSpec((tr, lanes), lambda r: (r, 0)),
        pl.BlockSpec((tr, lanes), lambda r: (r, 0)),
    ]

    if has_cw:
        cw = jnp.asarray(code_weights, dtype=jnp.float32).reshape(C)
        cw_row = jnp.tile(cw, K).reshape(1, lanes)   # cw_row[l] == cw[l % C]
        args.append(cw_row)
        in_specs.append(pl.BlockSpec((1, lanes), lambda r: (0, 0)))

    if has_w:
        assert weights.shape[0] == B and weights.shape[1] == A
        w_flat = jnp.asarray(weights, dtype=jnp.float32).reshape(-1)
        if R * K != BA:
            w_flat = jnp.pad(w_flat, (0, R * K - BA))
        w2 = w_flat.reshape(R, K)
        # constant expansion matrix: E[k, l] = 1  iff  k == l // C
        expand = (jnp.arange(K, dtype=jnp.int32)[:, None]
                  == (jnp.arange(lanes, dtype=jnp.int32)[None, :] // C)
                  ).astype(jnp.float32)
        args += [w2, expand]
        in_specs += [
            pl.BlockSpec((tr, K), lambda r: (r, 0)),
            pl.BlockSpec((K, lanes), lambda r: (0, 0)),
        ]

    bytes_accessed = n_slab * (2 * in_itemsize + jnp.dtype(out_dtype).itemsize)
    flops = 8 * n_slab
    if has_cw:
        bytes_accessed += lanes * 4
    if has_w:
        bytes_accessed += R * K * 4 + K * lanes * 4
        flops += 2 * K * n_slab

    kernel = functools.partial(_wsl1_kernel, beta=float(beta),
                               has_cw=has_cw, has_w=has_w,
                               compute_dtype=compute_dtype)

    out2 = pl.pallas_call(
        kernel,
        out_shape=jax.ShapeDtypeStruct((R, lanes), out_dtype),
        grid=(grid_r,),
        in_specs=in_specs,
        out_specs=pl.BlockSpec((tr, lanes), lambda r: (r, 0)),
        compiler_params=pltpu.CompilerParams(
            dimension_semantics=("parallel",),
            vmem_limit_bytes=_VMEM_LIMIT_BYTES),
        cost_estimate=pl.CostEstimate(flops=int(flops), transcendentals=0,
                                      bytes_accessed=int(bytes_accessed)),
    )(*args)

    if ragged:
        return out2.reshape(-1)[:N].reshape(B, A, C)
    return out2.reshape(B, A, C)


def _reference(inp, target, weights, code_weights, beta):
    # Pure-JAX f32 reference mirroring the PyTorch forward.
    inp = inp.astype(jnp.float32)
    target = target.astype(jnp.float32)
    target = jnp.where(jnp.isnan(target), inp, target)
    diff = inp - target
    if code_weights is not None:
        diff = diff * jnp.asarray(code_weights, jnp.float32).reshape(1, 1, -1)
    n = jnp.abs(diff)
    if beta < 1e-5:
        loss = n
    else:
        loss = jnp.where(n < beta, 0.5 * n ** 2 / beta, n - 0.5 * beta)
    if weights is not None:
        loss = loss * weights.astype(jnp.float32)[..., None]
    return loss


if __name__ == "__main__":
    beta = 1.0 / 9.0
    key = jax.random.PRNGKey(0)

    # Case 1: weighted + code-weighted + NaNs, C=8 (LANES=128, K=16),
    # R=125 -> partial last row-block handled by Pallas boundary masking.
    B, A, C = 2, 1000, 8
    k1, k2, k3, k4 = jax.random.split(key, 4)
    inp = jax.random.normal(k1, (B, A, C), dtype=jnp.float32)
    tgt = jax.random.normal(k2, (B, A, C), dtype=jnp.float32)
    tgt = jnp.where(jax.random.bernoulli(k3, 0.1, (B, A, C)), jnp.nan, tgt)
    w = jax.random.uniform(k4, (B, A), dtype=jnp.float32)
    cw = 1.0 + 0.1 * jnp.arange(C, dtype=jnp.float32)

    out1 = jax.block_until_ready(weighted_smooth_l1_loss(inp, tgt, w, cw, beta))
    ref1 = _reference(inp, tgt, w, cw, beta)
    assert out1.shape == (B, A, C)
    assert jnp.allclose(out1, ref1, atol=1e-6, rtol=1e-5), "case 1 mismatch"

    # Case 2: same data, small forced tiles (more grid steps + partial block).
    out2 = jax.block_until_ready(
        weighted_smooth_l1_loss(inp, tgt, w, cw, beta, block_rows=8))
    assert jnp.allclose(out2, ref1, atol=1e-6, rtol=1e-5), "case 2 mismatch"

    # Case 3: C=7 (LANES=896), no weights / no code weights, ragged tail path.
    B3, A3, C3 = 2, 333, 7
    k5, k6, k7 = jax.random.split(k1, 3)
    inp3 = jax.random.normal(k5, (B3, A3, C3), dtype=jnp.float32)
    tgt3 = jax.random.normal(k6, (B3, A3, C3), dtype=jnp.float32)
    tgt3 = jnp.where(jax.random.bernoulli(k7, 0.1, (B3, A3, C3)), jnp.nan, tgt3)
    out3 = jax.block_until_ready(
        weighted_smooth_l1_loss(inp3, tgt3, None, None, beta))
    ref3 = _reference(inp3, tgt3, None, None, beta)
    assert out3.shape == (B3, A3, C3)
    assert jnp.allclose(out3, ref3, atol=1e-6, rtol=1e-5), "case 3 mismatch"

    # Case 4: bf16 inputs/outputs (bf16 VALU math on v6e/v7x, f32 elsewhere).
    inp4 = inp.astype(jnp.bfloat16)
    tgt4 = tgt.astype(jnp.bfloat16)
    out4 = jax.block_until_ready(weighted_smooth_l1_loss(inp4, tgt4, w, cw, beta))
    ref4 = _reference(inp4, tgt4, w, cw, beta)
    assert out4.dtype == jnp.bfloat16 and out4.shape == (B, A, C)
    assert jnp.allclose(out4.astype(jnp.float32), ref4,
                        atol=5e-2, rtol=5e-2), "case 4 mismatch"

    print("KERNEL_OK")
</pallas_src>

<mosaic_0001>
module attributes {stable_mosaic.version = 11 : i64} {
  func.func @_wsl1_kernel(%arg0: i32, %arg1: memref<32x128xf32, #tpu.memory_space<vmem>>, %arg2: memref<32x128xf32, #tpu.memory_space<vmem>>, %arg3: memref<1x128xf32, #tpu.memory_space<vmem>>, %arg4: memref<32x16xf32, #tpu.memory_space<vmem>>, %arg5: memref<16x128xf32, #tpu.memory_space<vmem>>, %arg6: memref<32x128xf32, #tpu.memory_space<vmem>>) attributes {dimension_semantics = [#tpu.dimension_semantics<parallel>], iteration_bounds = array<i64: 4>, scalar_prefetch = 0 : i64, scratch_operands = 0 : i64, tpu.core_type = #tpu.core_type<tc>, window_params = [{transform_indices = @transform_0, window_bounds = array<i64: 32, 128>}, {transform_indices = @transform_1, window_bounds = array<i64: 32, 128>}, {pipeline_mode = #tpu.pipeline_mode<synchronous>, transform_indices = @transform_2, window_bounds = array<i64: 1, 128>}, {transform_indices = @transform_3, window_bounds = array<i64: 32, 16>}, {pipeline_mode = #tpu.pipeline_mode<synchronous>, transform_indices = @transform_4, window_bounds = array<i64: 16, 128>}, {transform_indices = @transform_5, window_bounds = array<i64: 32, 128>}]} {
    %c0 = arith.constant 0 : index
    %c0_0 = arith.constant 0 : index
    %0 = vector.load %arg1[%c0, %c0_0] : memref<32x128xf32, #tpu.memory_space<vmem>>, vector<32x128xf32>
    %c0_1 = arith.constant 0 : index
    %c0_2 = arith.constant 0 : index
    %1 = vector.load %arg2[%c0_1, %c0_2] : memref<32x128xf32, #tpu.memory_space<vmem>>, vector<32x128xf32>
    %2 = arith.cmpf one, %1, %1 : vector<32x128xf32>
    %3 = arith.select %2, %0, %1 : vector<32x128xi1>, vector<32x128xf32>
    %4 = arith.subf %0, %3 : vector<32x128xf32>
    %c0_3 = arith.constant 0 : index
    %c0_4 = arith.constant 0 : index
    %5 = vector.load %arg3[%c0_3, %c0_4] : memref<1x128xf32, #tpu.memory_space<vmem>>, vector<1x128xf32>
    %6 = vector.broadcast %5 : vector<1x128xf32> to vector<32x128xf32>
    %7 = arith.mulf %4, %6 : vector<32x128xf32>
    %8 = math.absf %7 : vector<32x128xf32>
    %cst = arith.constant 0.111111112 : f32
    %9 = vector.broadcast %cst : f32 to vector<32x128xf32>
    %10 = arith.cmpf olt, %8, %9 : vector<32x128xf32>
    %11 = arith.mulf %8, %8 : vector<32x128xf32>
    %cst_5 = arith.constant 4.500000e+00 : f32
    %12 = vector.broadcast %cst_5 : f32 to vector<32x128xf32>
    %13 = arith.mulf %12, %11 : vector<32x128xf32>
    %cst_6 = arith.constant 0.055555556 : f32
    %14 = vector.broadcast %cst_6 : f32 to vector<32x128xf32>
    %15 = arith.subf %8, %14 : vector<32x128xf32>
    %16 = arith.select %10, %13, %15 : vector<32x128xi1>, vector<32x128xf32>
    %c0_7 = arith.constant 0 : index
    %c0_8 = arith.constant 0 : index
    %17 = vector.load %arg4[%c0_7, %c0_8] : memref<32x16xf32, #tpu.memory_space<vmem>>, vector<32x16xf32>
    %c0_9 = arith.constant 0 : index
    %c0_10 = arith.constant 0 : index
    %18 = vector.load %arg5[%c0_9, %c0_10] : memref<16x128xf32, #tpu.memory_space<vmem>>, vector<16x128xf32>
    %cst_11 = arith.constant dense<0.000000e+00> : vector<32x128xf32>
    %19 = tpu.matmul %17, %18, %cst_11 {dimension_numbers = #tpu.dot_dimension_numbers<[1], [0], [0], [1], [0, 0, 1, 1], [], []>} : vector<32x16xf32>, vector<16x128xf32>, vector<32x128xf32> -> vector<32x128xf32>
    %20 = arith.mulf %16, %19 : vector<32x128xf32>
    %c0_12 = arith.constant 0 : index
    %c0_13 = arith.constant 0 : index
    %21 = vector.load %arg6[%c0_12, %c0_13] : memref<32x128xf32, #tpu.memory_space<vmem>>, vector<32x128xf32>
    tpu.vector_store %arg6[%c0_12, %c0_13], %20 {strides = array<i32>} : memref<32x128xf32, #tpu.memory_space<vmem>>, vector<32x128xf32>,
    return
  }
  func.func @transform_0(%arg0: i32) -> (i32, i32) {
    %c0_i32 = arith.constant 0 : i32
    %c0_i32_0 = arith.constant 0 : i32
    return %arg0, %c0_i32 : i32, i32
  }
  func.func @transform_1(%arg0: i32) -> (i32, i32) {
    %c0_i32 = arith.constant 0 : i32
    %c0_i32_0 = arith.constant 0 : i32
    return %arg0, %c0_i32 : i32, i32
  }
  func.func @transform_2(%arg0: i32) -> (i32, i32) {
    %c0_i32 = arith.constant 0 : i32
    %c0_i32_0 = arith.constant 0 : i32
    %c0_i32_1 = arith.constant 0 : i32
    return %c0_i32, %c0_i32_0 : i32, i32
  }
  func.func @transform_3(%arg0: i32) -> (i32, i32) {
    %c0_i32 = arith.constant 0 : i32
    %c0_i32_0 = arith.constant 0 : i32
    return %arg0, %c0_i32 : i32, i32
  }
  func.func @transform_4(%arg0: i32) -> (i32, i32) {
    %c0_i32 = arith.constant 0 : i32
    %c0_i32_0 = arith.constant 0 : i32
    %c0_i32_1 = arith.constant 0 : i32
    return %c0_i32, %c0_i32_0 : i32, i32
  }
  func.func @transform_5(%arg0: i32) -> (i32, i32) {
    %c0_i32 = arith.constant 0 : i32
    %c0_i32_0 = arith.constant 0 : i32
    return %arg0, %c0_i32 : i32, i32
  }
}

</mosaic_0001>

<bundles_post_ra>
// kernel: tpu_custom_call.1
= control target key start
LH: loop header
LB: loop body
LE: loop exit
PB: predicated region body
PF: predicated region fallthrough
CT: control target
= control target key end

     0   :  { %10 = vsyncpa [#allocation3], 0  ;;  %s880_s0 = inlined_call_operand.vmem [shape: f32[125,128], index: 0, kind: input, shape index: {}]   ;;  %s881_s1 = inlined_call_operand.hbm [shape: f32[125,128], index: 1, kind: input, shape index: {}]   ;;  %s882_s2 = inlined_call_operand.vmem [shape: f32[1,128], index: 2, kind: input, shape index: {}]   ;;  %s883_s3 = inlined_call_operand.vmem [shape: f32[125,16], index: 3, kind: input, shape index: {}]   ;;  %s884_s4 = inlined_call_operand.vmem [shape: f32[16,128], index: 4, kind: input, shape index: {}]   ;;  %s885_s5 = inlined_call_operand.hbm [shape: f32[125,128], index: 5, kind: output, shape index: {}]  }
   0x1   :  { %12 = vsyncpa [#allocation3 + $0x1], 0 }
   0x2   :  { %13 = vsyncpa [#allocation4], 0 }
   0x3   :  { %15 = vsyncpa [#allocation4 + $0x1], 0  ;;  %s729_s18 = smov 0   ;;  %s731_s19 = smov 0  }
   0x4   :  { %s733_s20 = smov 0   ;;  %s735_s21 = smov 0  }
   0x5 LB: > { %s750_s22 = sadd.s32 4294967295, %s693_s21   ;;  %s512_s23 = sadd.s32 4294967294, %s693_s21   ;;  %s693_s21 = sphi %s735_s21, %s894_s21   ;;  %s689_s20 = sphi %s733_s20, %s893_s20   ;;  %s685_s19 = sphi %s731_s19, %s892_s19   ;;  %s681_s18 = sphi %s729_s18, %s891_s18  }
   0x6   : > { %s754_s24 = sadd.s32 1, %s693_s21   ;;  %s54_s25 = sadd.s32 1, %s689_s20 }
   0x7   : > { %s51_s26 = ssub.s32 %s693_s21, %s754_s24  ;;  %p61_p0 = scmp.ne.s32.totalorder %s689_s20, %s685_s19 }
   0x8   : > { %p52_p1 = scmp.eq.s32.totalorder %s51_s26, 0  ;;  %p62_p2 = scmp.eq.s32.totalorder %s693_s21, 0 }
   0x9   : > { %p67_p3 = scmp.ne.s32.totalorder %s685_s19, %s681_s18  ;;  %p68_p4 = scmp.eq.s32.totalorder %s750_s22, 0 }
   0xa   : > { %s766_s27 = scalar_select %p52_p1, %s689_s20, %s54_s25  }
   0xb   : > { %p768_p5 = por %p62_p2, %p61_p0  ;;  %p772_p6 = por %p68_p4, %p67_p3 }
   0xc   : > { %p159_p7 = scmp.eq.s32.totalorder %s750_s22, 3  ;;  %p165_p8 = scmp.eq.s32.totalorder %s512_s23, 3 }
   0xd   : > { %p558_p9 = scmp.lt.s32.totalorder %s693_s21, 4  ;;  %s200_s7 = sand.u32 1, %s689_s20  }
   0xe   : > { %p778_p10 = por %p159_p7, %p61_p0  ;;  %p782_p11 = por %p165_p8, %p67_p3 }
   0xf   : > { %s538_s8 = sshll.u32 %s693_s21, 5  ;;  %s515_s9 = sshll.u32 %s200_s7, 5 }
  0x10   : > { %s209_s12 = scalar_lea.hbm %s881_s1, %s538_s8  ;;  %s204_s14 = scalar_lea.vmem [#allocation2], %s515_s9 }
  0x11   : > { %s210_s13 = sshll.u32 %s209_s12, 4  ;;  %s212_s15 = sshll.u32 %s204_s14, 4  ;;  %s211_s13 = int_to_ptr.hbm [resolvable:$true] %s210_s13  ;;  %s213_s15 = int_to_ptr.vmem [resolvable:$true] %s212_s15 }
  0x12   : > { %p793_p12 = pnand %p558_p9, %p768_p5  ;;  %p518_p13 = scmp.ge.s32.totalorder %s693_s21, 1 }
  0x13   : > { %p229_p0 = scmp.lt.s32.totalorder %s693_s21, 5  ;;  %s201_s17 = scalar_lea.sflag [#allocation3], %s200_s7 }
  0x14   : > { %s597_s23 = sshra.s32 %s211_s13, 4  ;;  %p601_p2 = pneg %p793_p12  ;;  %s598_s23 = int_to_ptr.hbm [resolvable:$true] %s597_s23 }
  0x15   : > { %s599_s25 = scalar_lea.hbm %s598_s23, 32  ;;  %s604_s28 = scalar_lea.hbm %s881_s1, 128 }
  0x16   : > { %p600_p1 = scmp.ne.s32.totalorder %s598_s23, %s599_s25  ;;  %p605_p5 = scmp.lt.s32.totalorder %s598_s23, %s881_s1 }
  0x17   : > { %p606_p7 = scmp.lt.s32.totalorder %s604_s28, %s599_s25 }
  0x18   : > { %p602_p3 = pnand %p601_p2, %p600_p1 }
  0x19   : > { %p607_p8 = por %p606_p7, %p605_p5 }
  0x1a   : > { %p603_p4 = pneg %p602_p3 }
  0x1c   : > { %p608_p9 = pnand %p607_p8, %p603_p4 }
  0x1e   : > { %611 = shalt.err (!%p608_p9)
}
  0x1f   : > { %s695_s7 = smov 128   ;;  %s696_s11 = smov 8  }
  0x20   : > { %553 = dma.hbm_to_vmem [thread:$0]  (!%p793_p12), %s211_s13, 512, %s213_s15, %s201_s17, %s695_s7, %s695_s7, %s696_s11  }
  0x21   : > { %p230_p1 = pnand %p518_p13, %p229_p0 }
  0x22   : > { %s814_s12 = sand.u32 (!%p230_p1), 1, %s685_s19  }
  0x23   : > { %233 = sbr.rel (%p230_p1) target bundleno = 187 (0xbb), region = 40  ;;  %s519_s14 = sshll.u32 (!%p230_p1), %s814_s12, 5 }
  0x24   : > { %s236_s23 = scalar_lea.sflag (!%p230_p1), [#allocation3], %s814_s12  ;;  %s820_s25 = scalar_lea.vmem (!%p230_p1), [#allocation2], %s519_s14 }
  0x28   : > { %672 = dma.done.wait (%p772_p6), %s236_s23, 512  }
  0x29   : > { %674 = vsyncadd (%p772_p6), %s236_s23, 4294966784  ;;  %s521_s13 = sshll.u32 %s750_s22, 2  ;;  %v348_v0 = vld [vmem:[%s884_s4 + $0x8] sm:$0xff]  ;;  %v347_v1 = vld [vmem:[%s884_s4] sm:$0xff]  ;;  %vm349_vm0 = vcmask 130048   ;;  %s400_s28 = scalar_lea.sflag [#allocation4], %s814_s12 }
  0x2a   : > { %p278_p12 = scmp.lt.s32.totalorder %s521_s13, 15  ;;  %541 = vmatpush.msra.mxu2 %v348_v0  ;;  %542 = vmatpush.msra.mxu3 %v348_v0  ;;  %v295_v6 = vld [vmem:[%s820_s25] sm:$0xff]  ;;  %v296_v7 = vld [vmem:[%s820_s25 + $0x8] sm:$0xff]  ;;  %v297_v10 = vld [vmem:[%s820_s25 + $0x10] sm:$0xff]  ;;  %s647_s7 = scalar_lea.hbm %s885_s5, 128 }
  0x2b   : > { %376 = vmatpush.msra.mxu0 %v348_v0  ;;  %540 = vmatpush.msra.mxu1 %v348_v0  ;;  %vm299_vm1 = vcmp.ne.f32.partialorder %v295_v6, %v295_v6  ;;  %vm300_vm2 = vcmp.ne.f32.partialorder %v296_v7, %v296_v7  ;;  %v298_v11 = vld [vmem:[%s820_s25 + $0x18] sm:$0xff]  ;;  %vm301_vm3 = vcmp.ne.f32.partialorder %v297_v10, %v297_v10  ;;  %v596_v17 = vld [vmem:[%s882_s2] ss:$0 sm:$0xff]  ;;  %s539_s25 = sshll.u32 %s750_s22, 5 }
  0x2c   : > { %s896_s13 = smov (!%p278_p12, %s521_s13), 15  ;;  %544 = vmatpush.msra.mxu2 %v347_v1  ;;  %545 = vmatpush.msra.mxu3 %v347_v1  ;;  %vm302_vm4 = vcmp.ne.f32.partialorder %v298_v11, %v298_v11  ;;  %s411_s17 = scalar_lea.hbm %s885_s5, %s539_s25 }
  0x2d   : > { %s522_s15 = sshll.u32 %s896_s13, 3  ;;  %377 = vmatpush.msra.mxu0 %v347_v1  ;;  %543 = vmatpush.msra.mxu1 %v347_v1  ;;  %s414_s22 = sshll.u32 %s411_s17, 4  ;;  %s415_s22 = int_to_ptr.hbm [resolvable:$true] %s414_s22 }
  0x2e   : > { %s288_s26 = scalar_lea.vmem %s883_s3, %s522_s15  ;;  %s281_s11 = scalar_lea.vmem %s880_s0, %s522_s15 }
  0x2f   : > { %v345_v2 = vld [vmem:[%s288_s26 + $0x10] sm:$0xff]  ;;  %v346_v3 = vld [vmem:[%s288_s26 + $0x18] sm:$0xff]  ;;  %v343_v4 = vld [vmem:[%s288_s26] sm:$0xff]  ;;  %s641_s9 = sshra.s32 %s415_s22, 4  ;;  %s642_s9 = int_to_ptr.hbm [resolvable:$true] %s641_s9 }
  0x30   : > { %v344_v5 = vld [vmem:[%s288_s26 + $0x8] sm:$0xff]  ;;  %531 = vmatmul.msk.f32.vlgmr.msra.gmra.mxu2 %vm349_vm0, %v345_v2  ;;  %532 = vmatmul.msk.f32.vlgmr.msra.gmra.mxu3 %vm349_vm0, %v346_v3  ;;  %v291_v8 = vld [vmem:[%s281_s11] sm:$0xff]  ;;  %v293_v14 = vld [vmem:[%s281_s11 + $0x10] sm:$0xff]  ;;  %s276_s26 = scalar_lea.vmem [#allocation5], %s519_s14  ;;  %s643_s14 = scalar_lea.hbm %s642_s9, 32 }
  0x31   : > { %529 = vmatmul.msk.f32.vlgmr.msra.gmra.mxu0 %vm349_vm0, %v343_v4  ;;  %530 = vmatmul.msk.f32.vlgmr.msra.gmra.mxu1 %vm349_vm0, %v344_v5  ;;  %v292_v9 = vld [vmem:[%s281_s11 + $0x8] sm:$0xff]  ;;  %v303_v12 = vsel %vm299_vm1, %v291_v8, %v295_v6  ;;  %v294_v15 = vld [vmem:[%s281_s11 + $0x18] sm:$0xff]  ;;  %v305_v19 = vsel %vm301_vm3, %v293_v14, %v297_v10  ;;  %s412_s8 = sshll.u32 %s276_s26, 4  ;;  %p644_p6 = scmp.ne.s32.totalorder %s642_s9, %s643_s14  ;;  %s413_s8 = int_to_ptr.vmem [resolvable:$true] %s412_s8 }
  0x32   : > { %v304_v13 = vsel %vm300_vm2, %v292_v9, %v296_v7  ;;  %v307_v16 = vsub.f32 %v291_v8, %v303_v12  ;;  %v306_v20 = vsel %vm302_vm4, %v294_v15, %v298_v11  ;;  %v309_v22 = vsub.f32 %v293_v14, %v305_v19  ;;  %p648_p2 = scmp.lt.s32.totalorder %s642_s9, %s885_s5  ;;  %p649_p3 = scmp.lt.s32.totalorder %s647_s7, %s643_s14 }
  0x33   : > { %v308_v18 = vsub.f32 %v292_v9, %v304_v13  ;;  %v310_v24 = vsub.f32 %v294_v15, %v306_v20  ;;  %p645_p13 = pnand %p644_p6, %p778_p10 }
  0x34   : > { %v315_v21 = vmul.f32 %v596_v17, %v307_v16  ;;  %v317_v26 = vmul.f32 %v596_v17, %v309_v22  ;;  %p650_p4 = por %p649_p3, %p648_p2 }
  0x35   : > { %v316_v23 = vmul.f32 %v596_v17, %v308_v18  ;;  %v318_v28 = vmul.f32 %v596_v17, %v310_v24  ;;  %p646_p0 = pneg %p645_p13 }
  0x36   : > { %v319_v25 = vand.u32 2147483647, %v315_v21  ;;  %v321_v30 = vand.u32 2147483647, %v317_v26 }
  0x37   : > { %v320_v27 = vand.u32 2147483647, %v316_v23  ;;  %v322_v32 = vand.u32 2147483647, %v318_v28  ;;  %p651_p5 = pnand %p650_p4, %p646_p0 }
  0x38   : > { %v327_v29 = vmul.f32 %v319_v25, %v319_v25  ;;  %v525_v34 = vadd.f32 -0.055555556, %v319_v25  ;;  %v329_v35 = vmul.f32 %v321_v30, %v321_v30  ;;  %vm323_vm5 = vcmp.lt.f32.partialorder %v319_v25, 0.11111111 }
  0x39   : > { %v328_v31 = vmul.f32 %v320_v27, %v320_v27  ;;  %v526_v37 = vadd.f32 -0.055555556, %v320_v27  ;;  %v330_v38 = vmul.f32 %v322_v32, %v322_v32  ;;  %vm324_vm6 = vcmp.lt.f32.partialorder %v320_v27, 0.11111111 }
  0x3a   : > { %v331_v33 = vmul.f32 4.5, %v327_v29  ;;  %v333_v40 = vmul.f32 4.5, %v329_v35  ;;  %v527_v42 = vadd.f32 -0.055555556, %v321_v30  ;;  %v528_v44 = vadd.f32 -0.055555556, %v322_v32 }
  0x3b   : > { %v332_v36 = vmul.f32 4.5, %v328_v31  ;;  %v334_v43 = vmul.f32 4.5, %v330_v38  ;;  %vm325_vm7 = vcmp.lt.f32.partialorder %v321_v30, 0.11111111  ;;  %vm326_vm8 = vcmp.lt.f32.partialorder %v322_v32, 0.11111111 }
  0x3c   : > { %v339_v39 = vsel %vm323_vm5, %v331_v33, %v525_v34  ;;  %v341_v49 = vsel %vm325_vm7, %v333_v40, %v527_v42 }
  0x3d   : > { %v340_v41 = vsel %vm324_vm6, %v332_v36, %v526_v37  ;;  %v342_v50 = vsel %vm326_vm8, %v334_v43, %v528_v44 }
  0xae   : > { %v379_v45 = vpop.f32.mrf.mxu0  ;;  %v382_v46 = vpop.f32.mrf.mxu1 }
  0xaf   : > { %v391_v47 = vmul.f32 %v379_v45, %v339_v39  ;;  %v392_v48 = vmul.f32 %v382_v46, %v340_v41 }
  0xb1   : > { %395 = vst [vmem:[%s276_s26] sm:$0xff] %v391_v47 }
  0xb2   : > { %396 = vst [vmem:[%s276_s26 + $0x8] sm:$0xff] %v392_v48 }
  0xb3   : > { %v385_v51 = vpop.f32.mrf.mxu2  ;;  %v388_v52 = vpop.f32.mrf.mxu3 }
  0xb4   : > { %v393_v53 = vmul.f32 %v385_v51, %v341_v49  ;;  %v394_v54 = vmul.f32 %v388_v52, %v342_v50 }
  0xb6   : > { %397 = vst [vmem:[%s276_s26 + $0x10] sm:$0xff] %v393_v53 }
  0xb7   : > { %398 = vst [vmem:[%s276_s26 + $0x18] sm:$0xff] %v394_v54 }
  0xb8   : > { %654 = shalt.err (!%p651_p5)
}
  0xb9   : > { %s697_s12 = smov 128   ;;  %s698_s13 = smov 8  }
  0xba   : > { %548 = dma.vmem_to_hbm [thread:$0]  (%p778_p10), %s413_s8, 512, %s415_s22, %s400_s28, %s697_s12, %s697_s12, %s698_s13  }
  0xbb PF: > { %p559_p7 = scmp.ge.s32.totalorder %s693_s21, 2  ;;  %s429_s25 = sand.u32 1, %s681_s18  }
  0xbc   : > { %s430_s15 = scalar_lea.sflag [#allocation4], %s429_s25 }
  0xbd   : > { %p555_p8 = pnand %p559_p7, %p782_p11 }
  0xbf   : > { %p556_p9 = pneg %p555_p8 }
  0xc1   : > { %676 = dma.done.wait (%p556_p9), %s430_s15, 512  }
  0xc2   : > { %678 = vsyncadd (%p556_p9), %s430_s15, 4294966784  ;;  %p18_p1 = scmp.ge.s32.totalorder %s754_s24, 6   ;;  %s891_s18 = smov %s685_s19 }
  0xc3   : > { %s892_s19 = smov %s689_s20  ;;  %s893_s20 = smov %s766_s27 }
  0xc4   : > { %s894_s21 = smov %s754_s24  ;;  %20 = sbr.rel (!%p18_p1) target bundleno = 5 (0x5), region = 91 }
  0xc9   :  { %436 = vsyncpa [#allocation3], 1 }
  0xca   :  { %438 = vsyncpa [#allocation3 + $0x1], 1 }
  0xcb   :  { %439 = vsyncpa [#allocation4], 1 }
  0xcc   :  { %441 = vsyncpa [#allocation4 + $0x1], 1 }

</bundles_post_ra>
